<compile_context>
chip_gen: v5e
topology: v5e:2x2
jax: 0.10.0
libtpu: 0.0.40
codegen_flags: <defaults>
</compile_context>

<pallas_src>
import functools

import jax
import jax.numpy as jnp
from jax.experimental import pallas as pl
from jax.experimental.pallas import tpu as pltpu

LN_EPS = 1e-5  # torch.nn.LayerNorm default

_MIN_ROWS_PER_STEP = 256      # don't split M across grid steps below this
_VMEM_BUDGET = 40 << 20       # per-kernel VMEM target (fits v7x 64 MiB phys)
_VMEM_LIMIT_CAP = 48 << 20    # scoped-VMEM limit we request from Mosaic


def _cond_adapter_kernel(x_ref, w_ref, p_ref, o_ref):
    # x_ref: (tm, K) row tile (native dtype)
    # w_ref: (K,  N) projection weight (already transposed to K x N)
    # p_ref: (3,  N) packed [bias; gamma; beta]
    # o_ref: (tm, N) output tile
    x = x_ref[...]
    w = w_ref[...]
    p = p_ref[...].astype(jnp.float32)

    # Linear projection on the MXU, f32 accumulation, + bias.
    y = jnp.dot(x, w, preferred_element_type=jnp.float32) + p[0:1, :]

    # LayerNorm over the last dim -- two-pass statistics (numerically safe).
    inv_n = 1.0 / y.shape[-1]
    mean = jnp.sum(y, axis=-1, keepdims=True) * inv_n
    centered = y - mean
    var = jnp.sum(centered * centered, axis=-1, keepdims=True) * inv_n
    inv_std = jax.lax.rsqrt(var + LN_EPS)

    out = centered * inv_std * p[1:2, :] + p[2:3, :]
    o_ref[...] = out.astype(o_ref.dtype)


def _round_up(x, m):
    return ((x + m - 1) // m) * m


def _cdiv(a, b):
    return -(-a // b)


def _pick_tile_rows(M, tile_m, row_align):
    """Static row-tile selection.

    Returns tm such that either tm == M (block equals the full row extent, so
    any M is layout-legal) or tm is a multiple of row_align (sublane aligned,
    partial edge block handled by Pallas).  For moderate/large M we make sure
    there are >= 2 (preferably an even number of) grid steps so both v7x
    TensorCores get work under dimension_semantics=("parallel",).
    """
    if M <= tile_m:
        if M >= 2 * _MIN_ROWS_PER_STEP:
            return _round_up(_cdiv(M, 2), row_align)   # 2 steps for megacore
        return M                                       # single full-extent block
    n_tiles = _cdiv(M, tile_m)
    n_tiles += n_tiles & 1                             # even step count
    return _round_up(_cdiv(M, n_tiles), row_align)


def _vmem_bytes(tm, K, N, x_bytes, w_bytes, o_bytes):
    return (2 * tm * K * x_bytes      # x tile, double-buffered
            + 2 * tm * N * o_bytes    # out tile, double-buffered
            + 2 * K * N * w_bytes     # weight block (grid-invariant, 2 bufs)
            + 2 * 8 * N * 4           # packed params (sublane-padded)
            + 4 * tm * N * 4)         # f32 LN intermediates headroom


@functools.partial(jax.jit, static_argnames=("tile_m",))
def condition_adapter_forward(x, w, b, gamma, beta, tile_m=1024):
    """x: [B, S, K]; w: [K, N] (nn.Linear weight transposed); b/gamma/beta: [N].

    Returns [B, S, N] in x.dtype (bf16 in -> bf16 out, f32 stats inside).
    """
    B, S, K = x.shape
    N = w.shape[1]
    M = B * S

    x_bytes = jnp.dtype(x.dtype).itemsize
    w_bytes = jnp.dtype(w.dtype).itemsize
    row_align = 8 if x_bytes >= 4 else 16

    tm = _pick_tile_rows(M, _round_up(tile_m, row_align), row_align)
    # Clamp the tile so the double-buffered footprint stays inside the VMEM
    # budget (matters for real configs with larger K/N; no-op at 128x128).
    while tm > row_align and _vmem_bytes(tm, K, N, x_bytes, w_bytes, x_bytes) > _VMEM_BUDGET:
        tm = max(row_align, _round_up(tm // 2, row_align))

    grid = _cdiv(M, tm)
    vmem_limit = int(min(
        max(2 * _vmem_bytes(tm, K, N, x_bytes, w_bytes, x_bytes), 32 << 20),
        _VMEM_LIMIT_CAP))

    x2 = x.reshape(M, K)                       # row-major flatten, no copy
    params = jnp.stack([b, gamma, beta], axis=0)  # (3, N): one invariant block

    out = pl.pallas_call(
        _cond_adapter_kernel,
        out_shape=jax.ShapeDtypeStruct((M, N), x.dtype),
        grid_spec=pltpu.PrefetchScalarGridSpec(
            num_scalar_prefetch=0,
            grid=(grid,),
            in_specs=[
                pl.BlockSpec((tm, K), lambda i: (i, 0)),
                # Grid-invariant operands: same block index every step.
                pl.BlockSpec((K, N), lambda i: (0, 0)),
                pl.BlockSpec((3, N), lambda i: (0, 0)),
            ],
            out_specs=pl.BlockSpec((tm, N), lambda i: (i, 0)),
        ),
        compiler_params=pltpu.CompilerParams(
            dimension_semantics=("parallel",),
            vmem_limit_bytes=vmem_limit,
        ),
    )(x2, w, params)

    return out.reshape(B, S, N)


def reference_forward(x, w, b, gamma, beta):
    y = jnp.einsum("bsk,kn->bsn", x, w) + b
    mean = jnp.mean(y, axis=-1, keepdims=True)
    var = jnp.mean((y - mean) ** 2, axis=-1, keepdims=True)
    return (y - mean) / jnp.sqrt(var + LN_EPS) * gamma + beta


if __name__ == "__main__":
    # config = {"condition_dim": 128, "cross_attention_dim": 128}
    condition_dim = 128
    cross_attention_dim = 128

    key = jax.random.PRNGKey(0)
    kx, kw, kb, kg, kbeta, kx2, kx3 = jax.random.split(key, 7)

    # Deterministic synthetic parameters (nn.Linear stores weight [out, in];
    # we pass its transpose [K, N] to the kernel).
    w_t = jax.random.normal(kw, (condition_dim, cross_attention_dim),
                            dtype=jnp.float32) * (condition_dim ** -0.5)
    b = jax.random.normal(kb, (cross_attention_dim,), dtype=jnp.float32) * 0.02
    gamma = 1.0 + 0.1 * jax.random.normal(kg, (cross_attention_dim,),
                                          dtype=jnp.float32)
    beta = 0.1 * jax.random.normal(kbeta, (cross_attention_dim,),
                                   dtype=jnp.float32)

    # 1) Tiny problem (batch=2, seq=8 -> M=16): single full-extent block.
    x = jax.random.normal(kx, (2, 8, condition_dim), dtype=jnp.float32)
    out = jax.block_until_ready(condition_adapter_forward(x, w_t, b, gamma, beta))
    ref = reference_forward(x, w_t, b, gamma, beta)
    assert out.shape == (2, 8, cross_attention_dim)
    assert jnp.allclose(out, ref, atol=1e-4, rtol=1e-4), "mismatch (tiny)"

    # 2) Moderate M with a ragged edge block (M = 3*259 = 777): two grid steps
    #    (v7x megacore), no wrapper-side pad/slice, partial last tile.
    x_big = jax.random.normal(kx2, (3, 259, condition_dim), dtype=jnp.float32)
    out_big = jax.block_until_ready(
        condition_adapter_forward(x_big, w_t, b, gamma, beta))
    ref_big = reference_forward(x_big, w_t, b, gamma, beta)
    assert out_big.shape == (3, 259, cross_attention_dim)
    assert jnp.allclose(out_big, ref_big, atol=1e-4, rtol=1e-4), "mismatch (ragged)"

    # 3) bf16 activations/weights (halved HBM traffic), f32 accumulate + LN.
    x_bf = jax.random.normal(kx3, (2, 64, condition_dim),
                             dtype=jnp.float32).astype(jnp.bfloat16)
    w_bf = w_t.astype(jnp.bfloat16)
    b_bf, g_bf, be_bf = (p.astype(jnp.bfloat16) for p in (b, gamma, beta))
    out_bf = jax.block_until_ready(
        condition_adapter_forward(x_bf, w_bf, b_bf, g_bf, be_bf))
    ref_bf = reference_forward(x_bf.astype(jnp.float32), w_bf.astype(jnp.float32),
                               b_bf.astype(jnp.float32), g_bf.astype(jnp.float32),
                               be_bf.astype(jnp.float32))
    assert out_bf.dtype == jnp.bfloat16
    assert jnp.allclose(out_bf.astype(jnp.float32), ref_bf,
                        atol=5e-2, rtol=5e-2), "mismatch (bf16)"

    print("KERNEL_OK")
</pallas_src>

<mosaic_0001>
module attributes {stable_mosaic.version = 11 : i64} {
  func.func @_cond_adapter_kernel(%arg0: i32, %arg1: memref<16x128xf32, #tpu.memory_space<vmem>>, %arg2: memref<128x128xf32, #tpu.memory_space<vmem>>, %arg3: memref<3x128xf32, #tpu.memory_space<vmem>>, %arg4: memref<16x128xf32, #tpu.memory_space<vmem>>) attributes {dimension_semantics = [#tpu.dimension_semantics<parallel>], iteration_bounds = array<i64: 1>, scalar_prefetch = 0 : i64, scratch_operands = 0 : i64, tpu.core_type = #tpu.core_type<tc>, window_params = [{transform_indices = @transform_0, window_bounds = array<i64: 16, 128>}, {pipeline_mode = #tpu.pipeline_mode<synchronous>, transform_indices = @transform_1, window_bounds = array<i64: 128, 128>}, {pipeline_mode = #tpu.pipeline_mode<synchronous>, transform_indices = @transform_2, window_bounds = array<i64: 3, 128>}, {transform_indices = @transform_3, window_bounds = array<i64: 16, 128>}]} {
    %c0 = arith.constant 0 : index
    %c0_0 = arith.constant 0 : index
    %0 = vector.load %arg1[%c0, %c0_0] : memref<16x128xf32, #tpu.memory_space<vmem>>, vector<16x128xf32>
    %c0_1 = arith.constant 0 : index
    %c0_2 = arith.constant 0 : index
    %1 = vector.load %arg2[%c0_1, %c0_2] : memref<128x128xf32, #tpu.memory_space<vmem>>, vector<128x128xf32>
    %c0_3 = arith.constant 0 : index
    %c0_4 = arith.constant 0 : index
    %2 = vector.load %arg3[%c0_3, %c0_4] : memref<3x128xf32, #tpu.memory_space<vmem>>, vector<3x128xf32>
    %cst = arith.constant dense<0.000000e+00> : vector<16x128xf32>
    %3 = tpu.matmul %0, %1, %cst {dimension_numbers = #tpu.dot_dimension_numbers<[1], [0], [0], [1], [0, 0, 1, 1], [], []>} : vector<16x128xf32>, vector<128x128xf32>, vector<16x128xf32> -> vector<16x128xf32>
    %4 = vector.extract_strided_slice %2 {offsets = [0, 0], sizes = [1, 128], strides = [1, 1]} : vector<3x128xf32> to vector<1x128xf32>
    %5 = vector.broadcast %4 : vector<1x128xf32> to vector<16x128xf32>
    %6 = arith.addf %3, %5 : vector<16x128xf32>
    %cst_5 = arith.constant dense<0.000000e+00> : vector<16xf32>
    %7 = vector.multi_reduction <add>, %6, %cst_5 [1] : vector<16x128xf32> to vector<16xf32>
    %8 = vector.shape_cast %7 : vector<16xf32> to vector<16x1xf32>
    %cst_6 = arith.constant 7.812500e-03 : f32
    %9 = vector.broadcast %cst_6 : f32 to vector<16x1xf32>
    %10 = arith.mulf %8, %9 : vector<16x1xf32>
    %11 = vector.broadcast %10 : vector<16x1xf32> to vector<16x128xf32>
    %12 = arith.subf %6, %11 : vector<16x128xf32>
    %13 = arith.mulf %12, %12 : vector<16x128xf32>
    %cst_7 = arith.constant dense<0.000000e+00> : vector<16xf32>
    %14 = vector.multi_reduction <add>, %13, %cst_7 [1] : vector<16x128xf32> to vector<16xf32>
    %15 = vector.shape_cast %14 : vector<16xf32> to vector<16x1xf32>
    %cst_8 = arith.constant 7.812500e-03 : f32
    %16 = vector.broadcast %cst_8 : f32 to vector<16x1xf32>
    %17 = arith.mulf %15, %16 : vector<16x1xf32>
    %cst_9 = arith.constant 9.99999974E-6 : f32
    %18 = vector.broadcast %cst_9 : f32 to vector<16x1xf32>
    %19 = arith.addf %17, %18 : vector<16x1xf32>
    %20 = math.rsqrt %19 : vector<16x1xf32>
    %21 = vector.broadcast %20 : vector<16x1xf32> to vector<16x128xf32>
    %22 = arith.mulf %12, %21 : vector<16x128xf32>
    %23 = vector.extract_strided_slice %2 {offsets = [1, 0], sizes = [1, 128], strides = [1, 1]} : vector<3x128xf32> to vector<1x128xf32>
    %24 = vector.broadcast %23 : vector<1x128xf32> to vector<16x128xf32>
    %25 = arith.mulf %22, %24 : vector<16x128xf32>
    %26 = vector.extract_strided_slice %2 {offsets = [2, 0], sizes = [1, 128], strides = [1, 1]} : vector<3x128xf32> to vector<1x128xf32>
    %27 = vector.broadcast %26 : vector<1x128xf32> to vector<16x128xf32>
    %28 = arith.addf %25, %27 : vector<16x128xf32>
    %c0_10 = arith.constant 0 : index
    %c0_11 = arith.constant 0 : index
    %29 = vector.load %arg4[%c0_10, %c0_11] : memref<16x128xf32, #tpu.memory_space<vmem>>, vector<16x128xf32>
    tpu.vector_store %arg4[%c0_10, %c0_11], %28 {strides = array<i32>} : memref<16x128xf32, #tpu.memory_space<vmem>>, vector<16x128xf32>,
    return
  }
  func.func @transform_0(%arg0: i32) -> (i32, i32) {
    %c0_i32 = arith.constant 0 : i32
    %c0_i32_0 = arith.constant 0 : i32
    return %arg0, %c0_i32 : i32, i32
  }
  func.func @transform_1(%arg0: i32) -> (i32, i32) {
    %c0_i32 = arith.constant 0 : i32
    %c0_i32_0 = arith.constant 0 : i32
    %c0_i32_1 = arith.constant 0 : i32
    return %c0_i32, %c0_i32_0 : i32, i32
  }
  func.func @transform_2(%arg0: i32) -> (i32, i32) {
    %c0_i32 = arith.constant 0 : i32
    %c0_i32_0 = arith.constant 0 : i32
    %c0_i32_1 = arith.constant 0 : i32
    return %c0_i32, %c0_i32_0 : i32, i32
  }
  func.func @transform_3(%arg0: i32) -> (i32, i32) {
    %c0_i32 = arith.constant 0 : i32
    %c0_i32_0 = arith.constant 0 : i32
    return %arg0, %c0_i32 : i32, i32
  }
}

</mosaic_0001>

<bundles_post_ra>
// kernel: condition_adapter_forward.1
= control target key start
LH: loop header
LB: loop body
LE: loop exit
PB: predicated region body
PF: predicated region fallthrough
CT: control target
= control target key end

     0   :  { %8 = vsyncpa [#allocation3], 0  ;;  %s307_s0 = inlined_call_operand.hbm [shape: f32[16,128], index: 0, kind: input, shape index: {}]   ;;  %s308_s1 = inlined_call_operand.hbm [shape: f32[128,128], index: 1, kind: input, shape index: {}]   ;;  %s309_s2 = inlined_call_operand.vmem [shape: f32[3,128], index: 2, kind: input, shape index: {}]   ;;  %s310_s3 = inlined_call_operand.hbm [shape: f32[16,128], index: 3, kind: output, shape index: {}]  }
   0x1   :  { %9 = vsyncpa [#allocation6], 0 }
   0x2   :  { %10 = vsyncpa [#allocation4], 0  ;;  %s15_s14 = sshll.u32 %s307_s0, 4  ;;  %s261_s15 = smov [#allocation2]   ;;  %s16_s14 = int_to_ptr.hbm [resolvable:$true] %s15_s14 }
   0x3   :  { %s17_s16 = sshll.u32 %s261_s15, 4  ;;  %s28_s19 = sshll.u32 %s308_s1, 4  ;;  %s18_s16 = int_to_ptr.vmem [resolvable:$true] %s17_s16  ;;  %s29_s19 = int_to_ptr.hbm [resolvable:$true] %s28_s19 }
   0x4   :  { %s262_s20 = smov 128   ;;  %s263_s21 = smov 8  }
   0x5   :  { %23 = dma.hbm_to_vmem [thread:$0]  %s16_s14, 256, %s18_s16, [#allocation3], %s262_s20, %s262_s20, %s263_s21  }
   0x6   :  { %s264_s22 = smov [#allocation5]  }
   0x7   :  { %s30_s23 = sshll.u32 %s264_s22, 4  ;;  %s31_s23 = int_to_ptr.vmem [resolvable:$true] %s30_s23 }
   0x8   :  { %36 = dma.hbm_to_vmem [thread:$0]  %s29_s19, 2048, %s31_s23, [#allocation6], %s262_s20, %s262_s20, %s263_s21  }
   0x9   :  { %255 = dma.done.wait [#allocation3], 256  }
   0xa   :  { %256 = vsyncadd [#allocation3], 4294967040 }
   0xb   :  { %257 = dma.done.wait [#allocation6], 2048  }
   0xc   :  { %258 = vsyncadd [#allocation6], 4294965248  ;;  %v64_v0 = vld [vmem:[#allocation5 + $0x78] sm:$0xff]  ;;  %v63_v1 = vld [vmem:[#allocation5 + $0x70] sm:$0xff]  ;;  %s144_s27 = sshll.u32 %s310_s3, 4  ;;  %s145_s27 = int_to_ptr.hbm [resolvable:$true] %s144_s27 }
   0xd   :  { %67 = vmatpush.msra.mxu0 %v64_v0  ;;  %158 = vmatpush.msra.mxu1 %v64_v0  ;;  %v62_v2 = vld [vmem:[#allocation5 + $0x68] sm:$0xff]  ;;  %v61_v3 = vld [vmem:[#allocation5 + $0x60] sm:$0xff]  ;;  %v60_v4 = vld [vmem:[#allocation5 + $0x58] sm:$0xff] }
   0xe   :  { %v59_v5 = vld [vmem:[#allocation5 + $0x50] sm:$0xff]  ;;  %v58_v6 = vld [vmem:[#allocation5 + $0x48] sm:$0xff]  ;;  %v57_v7 = vld [vmem:[#allocation5 + $0x40] sm:$0xff] }
   0xf   :  { %68 = vmatpush.msra.mxu0 %v63_v1  ;;  %159 = vmatpush.msra.mxu1 %v63_v1  ;;  %v56_v8 = vld [vmem:[#allocation5 + $0x38] sm:$0xff]  ;;  %v55_v9 = vld [vmem:[#allocation5 + $0x30] sm:$0xff]  ;;  %v54_v10 = vld [vmem:[#allocation5 + $0x28] sm:$0xff] }
  0x10   :  { %v53_v11 = vld [vmem:[#allocation5 + $0x20] sm:$0xff]  ;;  %v52_v12 = vld [vmem:[#allocation5 + $0x18] sm:$0xff]  ;;  %v51_v13 = vld [vmem:[#allocation5 + $0x10] sm:$0xff] }
  0x11   :  { %69 = vmatpush.msra.mxu0 %v62_v2  ;;  %160 = vmatpush.msra.mxu1 %v62_v2  ;;  %v50_v14 = vld [vmem:[#allocation5 + $0x8] sm:$0xff]  ;;  %v49_v15 = vld [vmem:[#allocation5] sm:$0xff]  ;;  %v47_v16 = vld [vmem:[#allocation2] sm:$0xff] }
  0x12   :  { %v48_v17 = vld [vmem:[#allocation2 + $0x8] sm:$0xff]  ;;  %v65_v18 = vld [vmem:[%s309_s2] sm:$0x7]  ;;  %s265_s2 = smov [#allocation7]  }
  0x13   :  { %70 = vmatpush.msra.mxu0 %v61_v3  ;;  %161 = vmatpush.msra.mxu1 %v61_v3  ;;  %v66_v19 = vperm.slane %v65_v18, 0  ;;  %v130_v46 = vperm.slane %v65_v18, 1  ;;  %v133_v49 = vperm.slane %v65_v18, 2  ;;  %s142_s24 = sshll.u32 %s265_s2, 4  ;;  %s143_s24 = int_to_ptr.vmem [resolvable:$true] %s142_s24 }
  0x15   :  { %71 = vmatpush.msra.mxu0 %v60_v4  ;;  %162 = vmatpush.msra.mxu1 %v60_v4 }
  0x17   :  { %72 = vmatpush.msra.mxu0 %v59_v5  ;;  %163 = vmatpush.msra.mxu1 %v59_v5 }
  0x19   :  { %73 = vmatpush.msra.mxu0 %v58_v6  ;;  %164 = vmatpush.msra.mxu1 %v58_v6 }
  0x1b   :  { %74 = vmatpush.msra.mxu0 %v57_v7  ;;  %165 = vmatpush.msra.mxu1 %v57_v7 }
  0x1d   :  { %75 = vmatpush.msra.mxu0 %v56_v8  ;;  %166 = vmatpush.msra.mxu1 %v56_v8 }
  0x1f   :  { %76 = vmatpush.msra.mxu0 %v55_v9  ;;  %167 = vmatpush.msra.mxu1 %v55_v9 }
  0x21   :  { %77 = vmatpush.msra.mxu0 %v54_v10  ;;  %168 = vmatpush.msra.mxu1 %v54_v10 }
  0x23   :  { %78 = vmatpush.msra.mxu0 %v53_v11  ;;  %169 = vmatpush.msra.mxu1 %v53_v11 }
  0x25   :  { %79 = vmatpush.msra.mxu0 %v52_v12  ;;  %170 = vmatpush.msra.mxu1 %v52_v12 }
  0x27   :  { %80 = vmatpush.msra.mxu0 %v51_v13  ;;  %171 = vmatpush.msra.mxu1 %v51_v13 }
  0x29   :  { %81 = vmatpush.msra.mxu0 %v50_v14  ;;  %172 = vmatpush.msra.mxu1 %v50_v14 }
  0x2b   :  { %82 = vmatpush.msra.mxu0 %v49_v15  ;;  %173 = vmatpush.msra.mxu1 %v49_v15 }
  0x2c   :  { %83 = vmatmul.f32.vlgmr.msra.gmra.mxu0 %v47_v16  ;;  %86 = vmatmul.f32.vlgmr.msra.gmra.mxu1 %v48_v17 }
  0xa9   :  { %v84_v20 = vpop.f32.mrf.mxu0  ;;  %v87_v22 = vpop.f32.mrf.mxu1 }
  0xaa   :  { %v85_v21 = vadd.f32 %v84_v20, %v66_v19  ;;  %v88_v23 = vadd.f32 %v87_v22, %v66_v19 }
  0xac   :  { %90 = vadd.xlane.f32.xlu0 %v85_v21 }
  0xb4   :  { %92 = vadd.xlane.f32.xlu0 %v88_v23 }
 0x11f   :  { %v91_v24 = vpop.xlane.xlu0 %90 }
 0x120   :  { %v94_v25 = vmul.f32 0.0078125, %v91_v24 }
 0x122   :  { %v96_v26 = vsub.f32 %v85_v21, %v94_v25 }
 0x124   :  { %v98_v27 = vmul.f32 %v96_v26, %v96_v26 }
 0x126   :  { %100 = vadd.xlane.f32.xlu1 %v98_v27 }
 0x127   :  { %v93_v28 = vpop.xlane.xlu0 %92 }
 0x128   :  { %v95_v29 = vmul.f32 0.0078125, %v93_v28 }
 0x12a   :  { %v97_v30 = vsub.f32 %v88_v23, %v95_v29 }
 0x12c   :  { %v99_v31 = vmul.f32 %v97_v30, %v97_v30 }
 0x12e   :  { %102 = vadd.xlane.f32.xlu1 %v99_v31 }
 0x199   :  { %v101_v32 = vpop.xlane.xlu1 %100 }
 0x19a   :  { %v104_v33 = vmul.f32 0.0078125, %v101_v32 }
 0x19c   :  { %v106_v34 = vadd.f32 1e-05, %v104_v33 }
 0x19e   :  { %179 = vrsqrt.f32 %v106_v34  ;;  %vm114_vm1 = vweird.f32 %v106_v34 }
 0x1a1   :  { %v103_v35 = vpop.xlane.xlu1 %102 }
 0x1a2   :  { %v105_v36 = vmul.f32 0.0078125, %v103_v35 }
 0x1a4   :  { %v180_v37 = vpop.eup %179  ;;  %v107_v38 = vadd.f32 1e-05, %v105_v36 }
 0x1a5   :  { %v109_v39 = vmul.f32 %v180_v37, %v106_v34  ;;  %vm115_vm0 = vweird.f32 %v180_v37 }
 0x1a6   :  { %181 = vrsqrt.f32 %v107_v38  ;;  %vm116_vm2 = vmor %vm114_vm1, %vm115_vm0  ;;  %vm124_vm4 = vweird.f32 %v107_v38 }
 0x1a7   :  { %v110_v40 = vmul.f32 %v180_v37, %v109_v39 }
 0x1a9   :  { %v111_v41 = vmul.f32 0.5, %v110_v40 }
 0x1ab   :  { %v112_v42 = vsub.f32 1.5, %v111_v41 }
 0x1ac   :  { %v182_v43 = vpop.eup %181 }
 0x1ad   :  { %v113_v44 = vmul.f32 %v180_v37, %v112_v42  ;;  %v119_v45 = vmul.f32 %v182_v43, %v107_v38  ;;  %vm125_vm3 = vweird.f32 %v182_v43 }
 0x1ae   :  { %vm126_vm5 = vmor %vm124_vm4, %vm125_vm3 }
 0x1af   :  { %v117_v47 = vsel %vm116_vm2, %v180_v37, %v113_v44  ;;  %v120_v48 = vmul.f32 %v182_v43, %v119_v45 }
 0x1b0   :  { %v128_v50 = vmul.f32 %v117_v47, %v96_v26 }
 0x1b1   :  { %v121_v51 = vmul.f32 0.5, %v120_v48 }
 0x1b2   :  { %v131_v52 = vmul.f32 %v130_v46, %v128_v50 }
 0x1b3   :  { %v122_v53 = vsub.f32 1.5, %v121_v51 }
 0x1b4   :  { %v134_v54 = vadd.f32 %v133_v49, %v131_v52 }
 0x1b5   :  { %v123_v55 = vmul.f32 %v182_v43, %v122_v53 }
 0x1b6   :  { %136 = vst [vmem:[#allocation7] sm:$0xff] %v134_v54 }
 0x1b7   :  { %v127_v56 = vsel %vm126_vm5, %v182_v43, %v123_v55 }
 0x1b8   :  { %v129_v57 = vmul.f32 %v127_v56, %v97_v30 }
 0x1ba   :  { %v132_v58 = vmul.f32 %v130_v46, %v129_v57 }
 0x1bc   :  { %v135_v59 = vadd.f32 %v133_v49, %v132_v58 }
 0x1be   :  { %137 = vst [vmem:[#allocation7 + $0x8] sm:$0xff] %v135_v59 }
 0x1bf   :  { %150 = dma.vmem_to_hbm [thread:$0]  %s143_s24, 256, %s145_s27, [#allocation4], %s262_s20, %s262_s20, %s263_s21  }
 0x1c0   :  { %259 = dma.done.wait [#allocation4], 256  }
 0x1c1   :  { %260 = vsyncadd [#allocation4], 4294967040 }
 0x1c2   :  { %155 = vsyncpa [#allocation3], 1 }
 0x1c3   :  { %156 = vsyncpa [#allocation6], 1 }
 0x1c4   :  { %157 = vsyncpa [#allocation4], 1 }

</bundles_post_ra>
